<compile_context>
chip_gen: v5e
topology: v5e:2x2
jax: 0.10.0
libtpu: 0.0.40
codegen_flags: <defaults>
</compile_context>

<pallas_src>
import functools
import math

import jax
import jax.numpy as jnp
from jax.experimental import pallas as pl
from jax.experimental.pallas import tpu as pltpu


def _mha_kernel(q_ref, k_ref, v_ref,
                wq_ref, wk_ref, wv_ref,
                bq_ref, bk_ref, bv_ref,
                wo_ref, bo_ref,
                o_ref, *, num_heads, sk_valid):
    Bt, Sq, E = q_ref.shape
    _, Sk, _ = k_ref.shape
    D = E // num_heads
    cdt = jnp.bfloat16
    f32 = jnp.float32

    # (Bt, S, E) -> (Bt*S, E): free relayout because S is padded to the bf16
    # sublane tile (16) in the wrapper.
    q2 = q_ref[...].reshape(Bt * Sq, E)
    k2 = k_ref[...].reshape(Bt * Sk, E)
    v2 = v_ref[...].reshape(Bt * Sk, E)

    # Full-width projections for all heads at once (MXU N = K = E).
    # Wq / bq already carry the 1/sqrt(head_dim) attention scale.
    Qp = jnp.dot(q2, wq_ref[...], preferred_element_type=f32) + bq_ref[...]
    Kp = jnp.dot(k2, wk_ref[...], preferred_element_type=f32) + bk_ref[...]
    Vp = jnp.dot(v2, wv_ref[...], preferred_element_type=f32) + bv_ref[...]
    Qp = Qp.reshape(Bt, Sq, E).astype(cdt)   # single cast, reused by every head
    Kp = Kp.reshape(Bt, Sk, E).astype(cdt)
    Vp = Vp.reshape(Bt, Sk, E).astype(cdt)

    # Additive score mask for zero-padded key rows (hoisted out of the head loop).
    score_bias = None
    if Sk != sk_valid:
        kpos = jax.lax.broadcasted_iota(jnp.int32, (1, 1, Sk), 2)
        score_bias = jnp.where(kpos < sk_valid,
                               jnp.float32(0.0), jnp.float32(-1e30))

    # Per-head scaled-dot-product attention on the VMEM-resident projections.
    # TODO(synk): for long key sequences, tile Sk with an online-softmax instead
    # of materializing the full (Bt, Sq, Sk) score tensor.
    ctx_parts = []
    for h in range(num_heads):                      # static unroll over heads
        lo = h * D
        Qh = Qp[:, :, lo:lo + D]
        Kh = Kp[:, :, lo:lo + D]
        Vh = Vp[:, :, lo:lo + D]
        s = jnp.einsum("bqd,bkd->bqk", Qh, Kh,
                       preferred_element_type=f32)              # (Bt, Sq, Sk) f32
        if score_bias is not None:
            s = s + score_bias
        m = jnp.max(s, axis=-1, keepdims=True)
        p = jnp.exp(s - m)
        denom = jnp.sum(p, axis=-1, keepdims=True)
        p = p * pl.reciprocal(denom, approx=True)               # EUP, not VPU divide
        ctx_parts.append(jnp.einsum("bqk,bkd->bqd", p.astype(cdt), Vh,
                                    preferred_element_type=f32))
    ctx = jnp.concatenate(ctx_parts, axis=-1) if num_heads > 1 else ctx_parts[0]

    # Single full-width output projection: contraction = E (not head_dim).
    ctx2 = ctx.reshape(Bt * Sq, E).astype(cdt)
    out = jnp.dot(ctx2, wo_ref[...], preferred_element_type=f32) + bo_ref[...]
    o_ref[...] = out.reshape(Bt, Sq, E).astype(o_ref.dtype)


def cross_attention_pallas(query, key, value, params, *, num_heads, block_b=None):
    """query/key/value: (B, S, E). Returns (B, Sq, E) in query.dtype."""
    B, Sq, E = query.shape
    Bk, Sk, Ek = key.shape
    assert Ek == E and value.shape == key.shape and Bk == B
    assert E % num_heads == 0
    D = E // num_heads
    scale = 1.0 / math.sqrt(D)
    out_dtype = query.dtype

    f32, bf16 = jnp.float32, jnp.bfloat16

    # bf16 activations at the pallas_call boundary (half the DMA), padded so the
    # in-kernel (Bt,S,E)->(Bt*S,E) merges are sublane-tile aligned (16 for bf16).
    SUB = 16
    Sq_p = ((Sq + SUB - 1) // SUB) * SUB
    Sk_p = ((Sk + SUB - 1) // SUB) * SUB

    def pad_seq(x, s_pad):
        s = x.shape[1]
        if s_pad != s:
            x = jnp.pad(x, ((0, 0), (0, s_pad - s), (0, 0)))
        return x.astype(bf16)

    q = pad_seq(query, Sq_p)
    k = pad_seq(key, Sk_p)
    v = pad_seq(value, Sk_p)

    # Fold the 1/sqrt(head_dim) scale into Wq / bq; pre-transpose to (E_in, E_out)
    # and cast weights to bf16 (MXU-native, half the weight DMA).
    wq_t = (params["wq"].astype(f32) * scale).T.astype(bf16)
    wk_t = params["wk"].astype(f32).T.astype(bf16)
    wv_t = params["wv"].astype(f32).T.astype(bf16)
    wo_t = params["wo"].astype(f32).T.astype(bf16)
    bq = (params["bq"].astype(f32) * scale).reshape(1, E)
    bk = params["bk"].astype(f32).reshape(1, E)
    bv = params["bv"].astype(f32).reshape(1, E)
    bo = params["bo"].astype(f32).reshape(1, E)

    # --- Generation-aware tiling / VMEM budget -------------------------------
    try:
        vmem_cap = int(pltpu.get_tpu_info().vmem_capacity_bytes)
    except Exception:
        vmem_cap = 64 << 20                       # conservative (v7x per-TC VMEM)
    budget = int(vmem_cap * 0.6)                  # headroom for compiler temps

    weight_bytes = 4 * E * E * 2 + 4 * E * 4      # resident bf16 weights + f32 biases
    per_b = 2 * ((Sq_p + 2 * Sk_p) * E * 2)       # bf16 q/k/v blocks, double-buffered
    per_b += 2 * (Sq_p * E * 4)                   # f32 output block, double-buffered
    per_b += (Sq_p + 2 * Sk_p) * E * 4            # f32 projected Q/K/V temporaries
    per_b += Sq_p * E * 4                         # f32 context
    per_b += 2 * Sq_p * Sk_p * 4                  # per-head scores / probs

    if block_b is None:
        block_b = max(1, min(B, (budget - weight_bytes) // max(per_b, 1)))
        # keep >= 2 batch tiles so the "parallel" axis can span both TensorCores
        while (B % block_b) or (block_b > 1 and B // block_b < 2):
            block_b -= 1
    assert B % block_b == 0

    need = weight_bytes + block_b * per_b + (4 << 20)
    vmem_limit = int(min(max(2 * need, 32 << 20), int(vmem_cap * 0.9)))

    # Advisory cost estimate for XLA's scheduler.
    flops = 2 * B * E * E * (Sq_p + 2 * Sk_p)      # q/k/v projections
    flops += 2 * 2 * B * E * Sq_p * Sk_p           # scores + context (all heads)
    flops += 2 * B * Sq_p * E * E                  # output projection
    bytes_accessed = (q.size + k.size + v.size) * 2 + weight_bytes + B * Sq_p * E * 4
    cost = pl.CostEstimate(flops=int(flops),
                           transcendentals=int(B * num_heads * Sq_p * Sk_p),
                           bytes_accessed=int(bytes_accessed))

    kernel = functools.partial(_mha_kernel, num_heads=num_heads, sk_valid=Sk)

    # TODO(synk): for very large embed_dim (full weight set no longer VMEM-resident),
    # fall back to head-group weight slabs on a second "arbitrary" grid axis.
    out = pl.pallas_call(
        kernel,
        out_shape=jax.ShapeDtypeStruct((B, Sq_p, E), out_dtype),
        grid_spec=pltpu.PrefetchScalarGridSpec(
            num_scalar_prefetch=0,
            grid=(B // block_b,),
            in_specs=[
                pl.BlockSpec((block_b, Sq_p, E), lambda b: (b, 0, 0)),   # query
                pl.BlockSpec((block_b, Sk_p, E), lambda b: (b, 0, 0)),   # key
                pl.BlockSpec((block_b, Sk_p, E), lambda b: (b, 0, 0)),   # value
                pl.BlockSpec((E, E), lambda b: (0, 0)),                  # Wq^T (scaled)
                pl.BlockSpec((E, E), lambda b: (0, 0)),                  # Wk^T
                pl.BlockSpec((E, E), lambda b: (0, 0)),                  # Wv^T
                pl.BlockSpec((1, E), lambda b: (0, 0)),                  # bq (scaled)
                pl.BlockSpec((1, E), lambda b: (0, 0)),                  # bk
                pl.BlockSpec((1, E), lambda b: (0, 0)),                  # bv
                pl.BlockSpec((E, E), lambda b: (0, 0)),                  # Wo^T
                pl.BlockSpec((1, E), lambda b: (0, 0)),                  # bo
            ],
            out_specs=pl.BlockSpec((block_b, Sq_p, E), lambda b: (b, 0, 0)),
        ),
        compiler_params=pltpu.CompilerParams(
            dimension_semantics=("parallel",),
            vmem_limit_bytes=vmem_limit),
        cost_estimate=cost,
    )(q, k, v, wq_t, wk_t, wv_t, bq, bk, bv, wo_t, bo)

    if Sq_p != Sq:
        out = out[:, :Sq, :]
    return out


def _reference_mha(query, key, value, params, *, num_heads):
    """Pure-JAX f32 reference of torch.nn.MultiheadAttention forward semantics."""
    B, Sq, E = query.shape
    D = E // num_heads
    Q = query @ params["wq"].T + params["bq"]
    K = key @ params["wk"].T + params["bk"]
    V = value @ params["wv"].T + params["bv"]
    Q = Q.reshape(B, Sq, num_heads, D).transpose(0, 2, 1, 3) / math.sqrt(D)
    K = K.reshape(B, -1, num_heads, D).transpose(0, 2, 1, 3)
    V = V.reshape(B, -1, num_heads, D).transpose(0, 2, 1, 3)
    s = jnp.einsum("bhqd,bhkd->bhqk", Q, K)
    p = jax.nn.softmax(s, axis=-1)
    ctx = jnp.einsum("bhqk,bhkd->bhqd", p, V)
    ctx = ctx.transpose(0, 2, 1, 3).reshape(B, Sq, E)
    return ctx @ params["wo"].T + params["bo"]


def init_params(key, embed_dim):
    """Deterministic synthetic init of nn.MultiheadAttention parameters."""
    ks = jax.random.split(key, 4)
    bound = 1.0 / math.sqrt(embed_dim)
    wq = jax.random.uniform(ks[0], (embed_dim, embed_dim), jnp.float32, -bound, bound)
    wk = jax.random.uniform(ks[1], (embed_dim, embed_dim), jnp.float32, -bound, bound)
    wv = jax.random.uniform(ks[2], (embed_dim, embed_dim), jnp.float32, -bound, bound)
    wo = jax.random.uniform(ks[3], (embed_dim, embed_dim), jnp.float32, -bound, bound)
    zeros = jnp.zeros((embed_dim,), jnp.float32)
    return {"wq": wq, "wk": wk, "wv": wv, "wo": wo,
            "bq": zeros, "bk": zeros, "bv": zeros, "bo": zeros}


if __name__ == "__main__":
    batch, seq, embed_dim, num_heads = 2, 8, 32, 4

    root = jax.random.PRNGKey(0)
    kq, kk, kv, kp = jax.random.split(root, 4)
    query = jax.random.normal(kq, (batch, seq, embed_dim), jnp.float32)
    key_t = jax.random.normal(kk, (batch, seq, embed_dim), jnp.float32)
    value = jax.random.normal(kv, (batch, seq, embed_dim), jnp.float32)
    params = init_params(kp, embed_dim)

    attn = jax.jit(functools.partial(cross_attention_pallas, num_heads=num_heads))
    out = jax.block_until_ready(attn(query, key_t, value, params))

    ref = _reference_mha(query, key_t, value, params, num_heads=num_heads)
    assert out.shape == (batch, seq, embed_dim)
    # bf16 inputs / matmul operands (f32 accumulation) -> loosened tolerance.
    assert jnp.allclose(out, ref, atol=5e-2, rtol=5e-2), "mismatch vs pure-JAX reference"

    # TODO(synk): attn_mask / key_padding_mask / dropout / attention-weight output
    # are not used by the module's forward and are not implemented.
    print("KERNEL_OK")
</pallas_src>

<mosaic_0001>
module attributes {stable_mosaic.version = 11 : i64} {
  func.func @_mha_kernel(%arg0: i32, %arg1: memref<1x16x32xbf16, #tpu.memory_space<vmem>>, %arg2: memref<1x16x32xbf16, #tpu.memory_space<vmem>>, %arg3: memref<1x16x32xbf16, #tpu.memory_space<vmem>>, %arg4: memref<32x32xbf16, #tpu.memory_space<vmem>>, %arg5: memref<32x32xbf16, #tpu.memory_space<vmem>>, %arg6: memref<32x32xbf16, #tpu.memory_space<vmem>>, %arg7: memref<1x32xf32, #tpu.memory_space<vmem>>, %arg8: memref<1x32xf32, #tpu.memory_space<vmem>>, %arg9: memref<1x32xf32, #tpu.memory_space<vmem>>, %arg10: memref<32x32xbf16, #tpu.memory_space<vmem>>, %arg11: memref<1x32xf32, #tpu.memory_space<vmem>>, %arg12: memref<1x16x32xf32, #tpu.memory_space<vmem>>) attributes {dimension_semantics = [#tpu.dimension_semantics<parallel>], iteration_bounds = array<i64: 2>, scalar_prefetch = 0 : i64, scratch_operands = 0 : i64, tpu.core_type = #tpu.core_type<tc>, window_params = [{transform_indices = @transform_0, window_bounds = array<i64: 1, 16, 32>}, {transform_indices = @transform_1, window_bounds = array<i64: 1, 16, 32>}, {transform_indices = @transform_2, window_bounds = array<i64: 1, 16, 32>}, {pipeline_mode = #tpu.pipeline_mode<synchronous>, transform_indices = @transform_3, window_bounds = array<i64: 32, 32>}, {pipeline_mode = #tpu.pipeline_mode<synchronous>, transform_indices = @transform_4, window_bounds = array<i64: 32, 32>}, {pipeline_mode = #tpu.pipeline_mode<synchronous>, transform_indices = @transform_5, window_bounds = array<i64: 32, 32>}, {pipeline_mode = #tpu.pipeline_mode<synchronous>, transform_indices = @transform_6, window_bounds = array<i64: 1, 32>}, {pipeline_mode = #tpu.pipeline_mode<synchronous>, transform_indices = @transform_7, window_bounds = array<i64: 1, 32>}, {pipeline_mode = #tpu.pipeline_mode<synchronous>, transform_indices = @transform_8, window_bounds = array<i64: 1, 32>}, {pipeline_mode = #tpu.pipeline_mode<synchronous>, transform_indices = @transform_9, window_bounds = array<i64: 32, 32>}, {pipeline_mode = #tpu.pipeline_mode<synchronous>, transform_indices = @transform_10, window_bounds = array<i64: 1, 32>}, {transform_indices = @transform_11, window_bounds = array<i64: 1, 16, 32>}]} {
    %c0 = arith.constant 0 : index
    %c0_0 = arith.constant 0 : index
    %c0_1 = arith.constant 0 : index
    %0 = vector.load %arg1[%c0, %c0_0, %c0_1] : memref<1x16x32xbf16, #tpu.memory_space<vmem>>, vector<1x16x32xbf16>
    %1 = vector.shape_cast %0 : vector<1x16x32xbf16> to vector<16x32xbf16>
    %c0_2 = arith.constant 0 : index
    %c0_3 = arith.constant 0 : index
    %c0_4 = arith.constant 0 : index
    %2 = vector.load %arg2[%c0_2, %c0_3, %c0_4] : memref<1x16x32xbf16, #tpu.memory_space<vmem>>, vector<1x16x32xbf16>
    %3 = vector.shape_cast %2 : vector<1x16x32xbf16> to vector<16x32xbf16>
    %c0_5 = arith.constant 0 : index
    %c0_6 = arith.constant 0 : index
    %c0_7 = arith.constant 0 : index
    %4 = vector.load %arg3[%c0_5, %c0_6, %c0_7] : memref<1x16x32xbf16, #tpu.memory_space<vmem>>, vector<1x16x32xbf16>
    %5 = vector.shape_cast %4 : vector<1x16x32xbf16> to vector<16x32xbf16>
    %c0_8 = arith.constant 0 : index
    %c0_9 = arith.constant 0 : index
    %6 = vector.load %arg4[%c0_8, %c0_9] : memref<32x32xbf16, #tpu.memory_space<vmem>>, vector<32x32xbf16>
    %cst = arith.constant dense<0.000000e+00> : vector<16x32xf32>
    %7 = tpu.matmul %1, %6, %cst {dimension_numbers = #tpu.dot_dimension_numbers<[1], [0], [0], [1], [0, 0, 1, 1], [], []>} : vector<16x32xbf16>, vector<32x32xbf16>, vector<16x32xf32> -> vector<16x32xf32>
    %c0_10 = arith.constant 0 : index
    %c0_11 = arith.constant 0 : index
    %8 = vector.load %arg7[%c0_10, %c0_11] : memref<1x32xf32, #tpu.memory_space<vmem>>, vector<1x32xf32>
    %9 = vector.broadcast %8 : vector<1x32xf32> to vector<16x32xf32>
    %10 = arith.addf %7, %9 : vector<16x32xf32>
    %c0_12 = arith.constant 0 : index
    %c0_13 = arith.constant 0 : index
    %11 = vector.load %arg5[%c0_12, %c0_13] : memref<32x32xbf16, #tpu.memory_space<vmem>>, vector<32x32xbf16>
    %cst_14 = arith.constant dense<0.000000e+00> : vector<16x32xf32>
    %12 = tpu.matmul %3, %11, %cst_14 {dimension_numbers = #tpu.dot_dimension_numbers<[1], [0], [0], [1], [0, 0, 1, 1], [], []>} : vector<16x32xbf16>, vector<32x32xbf16>, vector<16x32xf32> -> vector<16x32xf32>
    %c0_15 = arith.constant 0 : index
    %c0_16 = arith.constant 0 : index
    %13 = vector.load %arg8[%c0_15, %c0_16] : memref<1x32xf32, #tpu.memory_space<vmem>>, vector<1x32xf32>
    %14 = vector.broadcast %13 : vector<1x32xf32> to vector<16x32xf32>
    %15 = arith.addf %12, %14 : vector<16x32xf32>
    %c0_17 = arith.constant 0 : index
    %c0_18 = arith.constant 0 : index
    %16 = vector.load %arg6[%c0_17, %c0_18] : memref<32x32xbf16, #tpu.memory_space<vmem>>, vector<32x32xbf16>
    %cst_19 = arith.constant dense<0.000000e+00> : vector<16x32xf32>
    %17 = tpu.matmul %5, %16, %cst_19 {dimension_numbers = #tpu.dot_dimension_numbers<[1], [0], [0], [1], [0, 0, 1, 1], [], []>} : vector<16x32xbf16>, vector<32x32xbf16>, vector<16x32xf32> -> vector<16x32xf32>
    %c0_20 = arith.constant 0 : index
    %c0_21 = arith.constant 0 : index
    %18 = vector.load %arg9[%c0_20, %c0_21] : memref<1x32xf32, #tpu.memory_space<vmem>>, vector<1x32xf32>
    %19 = vector.broadcast %18 : vector<1x32xf32> to vector<16x32xf32>
    %20 = arith.addf %17, %19 : vector<16x32xf32>
    %21 = vector.shape_cast %10 : vector<16x32xf32> to vector<1x16x32xf32>
    %22 = arith.truncf %21 : vector<1x16x32xf32> to vector<1x16x32xbf16>
    %23 = vector.shape_cast %15 : vector<16x32xf32> to vector<1x16x32xf32>
    %24 = arith.truncf %23 : vector<1x16x32xf32> to vector<1x16x32xbf16>
    %25 = vector.shape_cast %20 : vector<16x32xf32> to vector<1x16x32xf32>
    %26 = arith.truncf %25 : vector<1x16x32xf32> to vector<1x16x32xbf16>
    %27 = tpu.iota {dimensions = array<i32: 2>} : vector<1x1x16xi32>
    %c8_i32 = arith.constant 8 : i32
    %28 = vector.broadcast %c8_i32 : i32 to vector<1x1x16xi32>
    %29 = arith.cmpi slt, %27, %28 : vector<1x1x16xi32>
    %cst_22 = arith.constant 0.000000e+00 : f32
    %cst_23 = arith.constant -1.000000e+30 : f32
    %30 = vector.broadcast %cst_22 : f32 to vector<1x1x16xf32>
    %31 = vector.broadcast %cst_23 : f32 to vector<1x1x16xf32>
    %32 = arith.select %29, %30, %31 : vector<1x1x16xi1>, vector<1x1x16xf32>
    %33 = vector.extract_strided_slice %22 {offsets = [0, 0, 0], sizes = [1, 16, 8], strides = [1, 1, 1]} : vector<1x16x32xbf16> to vector<1x16x8xbf16>
    %34 = vector.extract_strided_slice %24 {offsets = [0, 0, 0], sizes = [1, 16, 8], strides = [1, 1, 1]} : vector<1x16x32xbf16> to vector<1x16x8xbf16>
    %35 = vector.extract_strided_slice %26 {offsets = [0, 0, 0], sizes = [1, 16, 8], strides = [1, 1, 1]} : vector<1x16x32xbf16> to vector<1x16x8xbf16>
    "tpu.trace_start"() <{level = 10 : i32, message = "bqd,bkd->bqk"}> : () -> ()
    %cst_24 = arith.constant dense<0.000000e+00> : vector<1x16x16xf32>
    %36 = tpu.matmul %33, %34, %cst_24 {dimension_numbers = #tpu.dot_dimension_numbers<[2], [2], [1], [1], [0, 0, 0, 1, 1, 1], [0], [0]>} : vector<1x16x8xbf16>, vector<1x16x8xbf16>, vector<1x16x16xf32> -> vector<1x16x16xf32>
    "tpu.trace_stop"() : () -> ()
    %37 = vector.broadcast %32 : vector<1x1x16xf32> to vector<1x16x16xf32>
    %38 = arith.addf %36, %37 : vector<1x16x16xf32>
    %cst_25 = arith.constant dense<0xFF800000> : vector<1x16xf32>
    %39 = vector.multi_reduction <maximumf>, %38, %cst_25 [2] : vector<1x16x16xf32> to vector<1x16xf32>
    %40 = vector.shape_cast %39 : vector<1x16xf32> to vector<1x16x1xf32>
    %41 = vector.broadcast %40 : vector<1x16x1xf32> to vector<1x16x16xf32>
    %42 = arith.subf %38, %41 : vector<1x16x16xf32>
    %43 = math.exp %42 : vector<1x16x16xf32>
    %cst_26 = arith.constant dense<0.000000e+00> : vector<1x16xf32>
    %44 = vector.multi_reduction <add>, %43, %cst_26 [2] : vector<1x16x16xf32> to vector<1x16xf32>
    %45 = vector.shape_cast %44 : vector<1x16xf32> to vector<1x16x1xf32>
    %46 = tpu.reciprocal %45 {approx = true} : vector<1x16x1xf32> -> vector<1x16x1xf32>
    %47 = vector.broadcast %46 : vector<1x16x1xf32> to vector<1x16x16xf32>
    %48 = arith.mulf %43, %47 : vector<1x16x16xf32>
    %49 = arith.truncf %48 : vector<1x16x16xf32> to vector<1x16x16xbf16>
    "tpu.trace_start"() <{level = 10 : i32, message = "bqk,bkd->bqd"}> : () -> ()
    %cst_27 = arith.constant dense<0.000000e+00> : vector<1x16x8xf32>
    %50 = tpu.matmul %49, %35, %cst_27 {dimension_numbers = #tpu.dot_dimension_numbers<[2], [1], [1], [2], [0, 0, 0, 1, 1, 2], [0], [0]>} : vector<1x16x16xbf16>, vector<1x16x8xbf16>, vector<1x16x8xf32> -> vector<1x16x8xf32>
    "tpu.trace_stop"() : () -> ()
    %51 = vector.extract_strided_slice %22 {offsets = [0, 0, 8], sizes = [1, 16, 8], strides = [1, 1, 1]} : vector<1x16x32xbf16> to vector<1x16x8xbf16>
    %52 = vector.extract_strided_slice %24 {offsets = [0, 0, 8], sizes = [1, 16, 8], strides = [1, 1, 1]} : vector<1x16x32xbf16> to vector<1x16x8xbf16>
    %53 = vector.extract_strided_slice %26 {offsets = [0, 0, 8], sizes = [1, 16, 8], strides = [1, 1, 1]} : vector<1x16x32xbf16> to vector<1x16x8xbf16>
    "tpu.trace_start"() <{level = 10 : i32, message = "bqd,bkd->bqk"}> : () -> ()
    %cst_28 = arith.constant dense<0.000000e+00> : vector<1x16x16xf32>
    %54 = tpu.matmul %51, %52, %cst_28 {dimension_numbers = #tpu.dot_dimension_numbers<[2], [2], [1], [1], [0, 0, 0, 1, 1, 1], [0], [0]>} : vector<1x16x8xbf16>, vector<1x16x8xbf16>, vector<1x16x16xf32> -> vector<1x16x16xf32>
    "tpu.trace_stop"() : () -> ()
    %55 = vector.broadcast %32 : vector<1x1x16xf32> to vector<1x16x16xf32>
    %56 = arith.addf %54, %55 : vector<1x16x16xf32>
    %cst_29 = arith.constant dense<0xFF800000> : vector<1x16xf32>
    %57 = vector.multi_reduction <maximumf>, %56, %cst_29 [2] : vector<1x16x16xf32> to vector<1x16xf32>
    %58 = vector.shape_cast %57 : vector<1x16xf32> to vector<1x16x1xf32>
    %59 = vector.broadcast %58 : vector<1x16x1xf32> to vector<1x16x16xf32>
    %60 = arith.subf %56, %59 : vector<1x16x16xf32>
    %61 = math.exp %60 : vector<1x16x16xf32>
    %cst_30 = arith.constant dense<0.000000e+00> : vector<1x16xf32>
    %62 = vector.multi_reduction <add>, %61, %cst_30 [2] : vector<1x16x16xf32> to vector<1x16xf32>
    %63 = vector.shape_cast %62 : vector<1x16xf32> to vector<1x16x1xf32>
    %64 = tpu.reciprocal %63 {approx = true} : vector<1x16x1xf32> -> vector<1x16x1xf32>
    %65 = vector.broadcast %64 : vector<1x16x1xf32> to vector<1x16x16xf32>
    %66 = arith.mulf %61, %65 : vector<1x16x16xf32>
    %67 = arith.truncf %66 : vector<1x16x16xf32> to vector<1x16x16xbf16>
    "tpu.trace_start"() <{level = 10 : i32, message = "bqk,bkd->bqd"}> : () -> ()
    %cst_31 = arith.constant dense<0.000000e+00> : vector<1x16x8xf32>
    %68 = tpu.matmul %67, %53, %cst_31 {dimension_numbers = #tpu.dot_dimension_numbers<[2], [1], [1], [2], [0, 0, 0, 1, 1, 2], [0], [0]>} : vector<1x16x16xbf16>, vector<1x16x8xbf16>, vector<1x16x8xf32> -> vector<1x16x8xf32>
    "tpu.trace_stop"() : () -> ()
    %69 = vector.extract_strided_slice %22 {offsets = [0, 0, 16], sizes = [1, 16, 8], strides = [1, 1, 1]} : vector<1x16x32xbf16> to vector<1x16x8xbf16>
    %70 = vector.extract_strided_slice %24 {offsets = [0, 0, 16], sizes = [1, 16, 8], strides = [1, 1, 1]} : vector<1x16x32xbf16> to vector<1x16x8xbf16>
    %71 = vector.extract_strided_slice %26 {offsets = [0, 0, 16], sizes = [1, 16, 8], strides = [1, 1, 1]} : vector<1x16x32xbf16> to vector<1x16x8xbf16>
    "tpu.trace_start"() <{level = 10 : i32, message = "bqd,bkd->bqk"}> : () -> ()
    %cst_32 = arith.constant dense<0.000000e+00> : vector<1x16x16xf32>
    %72 = tpu.matmul %69, %70, %cst_32 {dimension_numbers = #tpu.dot_dimension_numbers<[2], [2], [1], [1], [0, 0, 0, 1, 1, 1], [0], [0]>} : vector<1x16x8xbf16>, vector<1x16x8xbf16>, vector<1x16x16xf32> -> vector<1x16x16xf32>
    "tpu.trace_stop"() : () -> ()
    %73 = vector.broadcast %32 : vector<1x1x16xf32> to vector<1x16x16xf32>
    %74 = arith.addf %72, %73 : vector<1x16x16xf32>
    %cst_33 = arith.constant dense<0xFF800000> : vector<1x16xf32>
    %75 = vector.multi_reduction <maximumf>, %74, %cst_33 [2] : vector<1x16x16xf32> to vector<1x16xf32>
    %76 = vector.shape_cast %75 : vector<1x16xf32> to vector<1x16x1xf32>
    %77 = vector.broadcast %76 : vector<1x16x1xf32> to vector<1x16x16xf32>
    %78 = arith.subf %74, %77 : vector<1x16x16xf32>
    %79 = math.exp %78 : vector<1x16x16xf32>
    %cst_34 = arith.constant dense<0.000000e+00> : vector<1x16xf32>
    %80 = vector.multi_reduction <add>, %79, %cst_34 [2] : vector<1x16x16xf32> to vector<1x16xf32>
    %81 = vector.shape_cast %80 : vector<1x16xf32> to vector<1x16x1xf32>
    %82 = tpu.reciprocal %81 {approx = true} : vector<1x16x1xf32> -> vector<1x16x1xf32>
    %83 = vector.broadcast %82 : vector<1x16x1xf32> to vector<1x16x16xf32>
    %84 = arith.mulf %79, %83 : vector<1x16x16xf32>
    %85 = arith.truncf %84 : vector<1x16x16xf32> to vector<1x16x16xbf16>
    "tpu.trace_start"() <{level = 10 : i32, message = "bqk,bkd->bqd"}> : () -> ()
    %cst_35 = arith.constant dense<0.000000e+00> : vector<1x16x8xf32>
    %86 = tpu.matmul %85, %71, %cst_35 {dimension_numbers = #tpu.dot_dimension_numbers<[2], [1], [1], [2], [0, 0, 0, 1, 1, 2], [0], [0]>} : vector<1x16x16xbf16>, vector<1x16x8xbf16>, vector<1x16x8xf32> -> vector<1x16x8xf32>
    "tpu.trace_stop"() : () -> ()
    %87 = vector.extract_strided_slice %22 {offsets = [0, 0, 24], sizes = [1, 16, 8], strides = [1, 1, 1]} : vector<1x16x32xbf16> to vector<1x16x8xbf16>
    %88 = vector.extract_strided_slice %24 {offsets = [0, 0, 24], sizes = [1, 16, 8], strides = [1, 1, 1]} : vector<1x16x32xbf16> to vector<1x16x8xbf16>
    %89 = vector.extract_strided_slice %26 {offsets = [0, 0, 24], sizes = [1, 16, 8], strides = [1, 1, 1]} : vector<1x16x32xbf16> to vector<1x16x8xbf16>
    "tpu.trace_start"() <{level = 10 : i32, message = "bqd,bkd->bqk"}> : () -> ()
    %cst_36 = arith.constant dense<0.000000e+00> : vector<1x16x16xf32>
    %90 = tpu.matmul %87, %88, %cst_36 {dimension_numbers = #tpu.dot_dimension_numbers<[2], [2], [1], [1], [0, 0, 0, 1, 1, 1], [0], [0]>} : vector<1x16x8xbf16>, vector<1x16x8xbf16>, vector<1x16x16xf32> -> vector<1x16x16xf32>
    "tpu.trace_stop"() : () -> ()
    %91 = vector.broadcast %32 : vector<1x1x16xf32> to vector<1x16x16xf32>
    %92 = arith.addf %90, %91 : vector<1x16x16xf32>
    %cst_37 = arith.constant dense<0xFF800000> : vector<1x16xf32>
    %93 = vector.multi_reduction <maximumf>, %92, %cst_37 [2] : vector<1x16x16xf32> to vector<1x16xf32>
    %94 = vector.shape_cast %93 : vector<1x16xf32> to vector<1x16x1xf32>
    %95 = vector.broadcast %94 : vector<1x16x1xf32> to vector<1x16x16xf32>
    %96 = arith.subf %92, %95 : vector<1x16x16xf32>
    %97 = math.exp %96 : vector<1x16x16xf32>
    %cst_38 = arith.constant dense<0.000000e+00> : vector<1x16xf32>
    %98 = vector.multi_reduction <add>, %97, %cst_38 [2] : vector<1x16x16xf32> to vector<1x16xf32>
    %99 = vector.shape_cast %98 : vector<1x16xf32> to vector<1x16x1xf32>
    %100 = tpu.reciprocal %99 {approx = true} : vector<1x16x1xf32> -> vector<1x16x1xf32>
    %101 = vector.broadcast %100 : vector<1x16x1xf32> to vector<1x16x16xf32>
    %102 = arith.mulf %97, %101 : vector<1x16x16xf32>
    %103 = arith.truncf %102 : vector<1x16x16xf32> to vector<1x16x16xbf16>
    "tpu.trace_start"() <{level = 10 : i32, message = "bqk,bkd->bqd"}> : () -> ()
    %cst_39 = arith.constant dense<0.000000e+00> : vector<1x16x8xf32>
    %104 = tpu.matmul %103, %89, %cst_39 {dimension_numbers = #tpu.dot_dimension_numbers<[2], [1], [1], [2], [0, 0, 0, 1, 1, 2], [0], [0]>} : vector<1x16x16xbf16>, vector<1x16x8xbf16>, vector<1x16x8xf32> -> vector<1x16x8xf32>
    "tpu.trace_stop"() : () -> ()
    %105 = tpu.concatenate %50, %68, %86, %104 in 2 : vector<1x16x8xf32>, vector<1x16x8xf32>, vector<1x16x8xf32>, vector<1x16x8xf32> -> vector<1x16x32xf32>
    %106 = vector.shape_cast %105 : vector<1x16x32xf32> to vector<16x32xf32>
    %107 = arith.truncf %106 : vector<16x32xf32> to vector<16x32xbf16>
    %c0_40 = arith.constant 0 : index
    %c0_41 = arith.constant 0 : index
    %108 = vector.load %arg10[%c0_40, %c0_41] : memref<32x32xbf16, #tpu.memory_space<vmem>>, vector<32x32xbf16>
    %cst_42 = arith.constant dense<0.000000e+00> : vector<16x32xf32>
    %109 = tpu.matmul %107, %108, %cst_42 {dimension_numbers = #tpu.dot_dimension_numbers<[1], [0], [0], [1], [0, 0, 1, 1], [], []>} : vector<16x32xbf16>, vector<32x32xbf16>, vector<16x32xf32> -> vector<16x32xf32>
    %c0_43 = arith.constant 0 : index
    %c0_44 = arith.constant 0 : index
    %110 = vector.load %arg11[%c0_43, %c0_44] : memref<1x32xf32, #tpu.memory_space<vmem>>, vector<1x32xf32>
    %111 = vector.broadcast %110 : vector<1x32xf32> to vector<16x32xf32>
    %112 = arith.addf %109, %111 : vector<16x32xf32>
    %113 = vector.shape_cast %112 : vector<16x32xf32> to vector<1x16x32xf32>
    %c0_45 = arith.constant 0 : index
    %c0_46 = arith.constant 0 : index
    %c0_47 = arith.constant 0 : index
    %114 = vector.load %arg12[%c0_45, %c0_46, %c0_47] : memref<1x16x32xf32, #tpu.memory_space<vmem>>, vector<1x16x32xf32>
    tpu.vector_store %arg12[%c0_45, %c0_46, %c0_47], %113 {strides = array<i32>} : memref<1x16x32xf32, #tpu.memory_space<vmem>>, vector<1x16x32xf32>,
    return
  }
  func.func @transform_0(%arg0: i32) -> (i32, i32, i32) {
    %c0_i32 = arith.constant 0 : i32
    %c0_i32_0 = arith.constant 0 : i32
    %c0_i32_1 = arith.constant 0 : i32
    return %arg0, %c0_i32, %c0_i32_0 : i32, i32, i32
  }
  func.func @transform_1(%arg0: i32) -> (i32, i32, i32) {
    %c0_i32 = arith.constant 0 : i32
    %c0_i32_0 = arith.constant 0 : i32
    %c0_i32_1 = arith.constant 0 : i32
    return %arg0, %c0_i32, %c0_i32_0 : i32, i32, i32
  }
  func.func @transform_2(%arg0: i32) -> (i32, i32, i32) {
    %c0_i32 = arith.constant 0 : i32
    %c0_i32_0 = arith.constant 0 : i32
    %c0_i32_1 = arith.constant 0 : i32
    return %arg0, %c0_i32, %c0_i32_0 : i32, i32, i32
  }
  func.func @transform_3(%arg0: i32) -> (i32, i32) {
    %c0_i32 = arith.constant 0 : i32
    %c0_i32_0 = arith.constant 0 : i32
    %c0_i32_1 = arith.constant 0 : i32
    return %c0_i32, %c0_i32_0 : i32, i32
  }
  func.func @transform_4(%arg0: i32) -> (i32, i32) {
    %c0_i32 = arith.constant 0 : i32
    %c0_i32_0 = arith.constant 0 : i32
    %c0_i32_1 = arith.constant 0 : i32
    return %c0_i32, %c0_i32_0 : i32, i32
  }
  func.func @transform_5(%arg0: i32) -> (i32, i32) {
    %c0_i32 = arith.constant 0 : i32
    %c0_i32_0 = arith.constant 0 : i32
    %c0_i32_1 = arith.constant 0 : i32
    return %c0_i32, %c0_i32_0 : i32, i32
  }
  func.func @transform_6(%arg0: i32) -> (i32, i32) {
    %c0_i32 = arith.constant 0 : i32
    %c0_i32_0 = arith.constant 0 : i32
    %c0_i32_1 = arith.constant 0 : i32
    return %c0_i32, %c0_i32_0 : i32, i32
  }
  func.func @transform_7(%arg0: i32) -> (i32, i32) {
    %c0_i32 = arith.constant 0 : i32
    %c0_i32_0 = arith.constant 0 : i32
    %c0_i32_1 = arith.constant 0 : i32
    return %c0_i32, %c0_i32_0 : i32, i32
  }
  func.func @transform_8(%arg0: i32) -> (i32, i32) {
    %c0_i32 = arith.constant 0 : i32
    %c0_i32_0 = arith.constant 0 : i32
    %c0_i32_1 = arith.constant 0 : i32
    return %c0_i32, %c0_i32_0 : i32, i32
  }
  func.func @transform_9(%arg0: i32) -> (i32, i32) {
    %c0_i32 = arith.constant 0 : i32
    %c0_i32_0 = arith.constant 0 : i32
    %c0_i32_1 = arith.constant 0 : i32
    return %c0_i32, %c0_i32_0 : i32, i32
  }
  func.func @transform_10(%arg0: i32) -> (i32, i32) {
    %c0_i32 = arith.constant 0 : i32
    %c0_i32_0 = arith.constant 0 : i32
    %c0_i32_1 = arith.constant 0 : i32
    return %c0_i32, %c0_i32_0 : i32, i32
  }
  func.func @transform_11(%arg0: i32) -> (i32, i32, i32) {
    %c0_i32 = arith.constant 0 : i32
    %c0_i32_0 = arith.constant 0 : i32
    %c0_i32_1 = arith.constant 0 : i32
    return %arg0, %c0_i32, %c0_i32_0 : i32, i32, i32
  }
}

</mosaic_0001>

<bundles_post_ra>
// kernel: cross_attention_pallas.1
= control target key start
LH: loop header
LB: loop body
LE: loop exit
PB: predicated region body
PF: predicated region fallthrough
CT: control target
= control target key end

     0   :  { %s1251_s17 = smov 0   ;;  %s1382_s0 = inlined_call_operand.vmem [shape: bf16[2,16,32], index: 0, kind: input, shape index: {}]   ;;  %s1383_s1 = inlined_call_operand.vmem [shape: bf16[2,16,32], index: 1, kind: input, shape index: {}]   ;;  %s1384_s2 = inlined_call_operand.vmem [shape: bf16[2,16,32], index: 2, kind: input, shape index: {}]   ;;  %s1385_s3 = inlined_call_operand.vmem [shape: bf16[32,32], index: 3, kind: input, shape index: {}]   ;;  %s1386_s4 = inlined_call_operand.vmem [shape: bf16[32,32], index: 4, kind: input, shape index: {}]   ;;  %s1387_s5 = inlined_call_operand.vmem [shape: bf16[32,32], index: 5, kind: input, shape index: {}]   ;;  %s1388_s6 = inlined_call_operand.vmem [shape: f32[1,32], index: 6, kind: input, shape index: {}]   ;;  %s1389_s7 = inlined_call_operand.vmem [shape: f32[1,32], index: 7, kind: input, shape index: {}]   ;;  %s1390_s8 = inlined_call_operand.vmem [shape: f32[1,32], index: 8, kind: input, shape index: {}]   ;;  %s1391_s9 = inlined_call_operand.vmem [shape: bf16[32,32], index: 9, kind: input, shape index: {}]   ;;  %s1392_s10 = inlined_call_operand.vmem [shape: f32[1,32], index: 10, kind: input, shape index: {}]   ;;  %s1393_s11 = inlined_call_operand.vmem [shape: f32[2,16,32], index: 11, kind: output, shape index: {}]  }
   0x1 LB: > { %s1024_s18 = sadd.s32 4294967295, %s1182_s17   ;;  %p1028_p0 = scmp.ge.s32.totalorder %s1182_s17, 1  ;;  %s1182_s17 = sphi %s1251_s17, %s21_s17  }
   0x2   : > { %p357_p1 = scmp.lt.s32.totalorder %s1182_s17, 3 }
   0x4   : > { %p358_p2 = pnand %p1028_p0, %p357_p1 }
   0x5   : > { %p407_p3 = scmp.lt.s32.totalorder (!%p358_p2), %s1024_s18, 1  ;;  %s1184_s21 = smov (!%p358_p2), 112  }
   0x6   : > { %361 = sbr.rel (%p358_p2) target bundleno = 1107 (0x453), region = 64  ;;  %s1185_s22 = smov (!%p358_p2), 120  }
   0x7   : > { %s1186_s23 = smov (!%p358_p2), 104   ;;  %s1189_s15 = smov (!%p358_p2), 24  }
   0x8   : > { %s1190_s16 = smov (!%p358_p2), 16  }
   0xb   : > { %v1103_v0 = vld [vmem:[%s1385_s3 + $0x8] sm:$0xff]  ;;  %v1102_v2 = vld [vmem:[%s1385_s3] sm:$0xff]  ;;  %s1395_s18 = smov (!%p407_p3, %s1024_s18), 1  ;;  %vm459_vm0 = vcmask 261120   ;;  %vm581_vm1 = vcmask 64512   ;;  %v567_v35 = vlaneseq  ;;  %vm602_vm3 = vcmask 130048  }
   0xc   : > { %v1105_v1 = vld [vmem:[%s1386_s4 + $0x8] sm:$0xff]  ;;  %469 = vmatpush.bf16.msra.mxu0 %v1103_v0  ;;  %v1104_v3 = vld [vmem:[%s1386_s4] sm:$0xff]  ;;  %s1274_s27 = sshll.u32 %s1395_s18, 3  ;;  %v1187_v38 = vmov -1e+30   ;;  %vm902_vm4 = vcmask 195584  }
   0xd   : > { %511 = vmatpush.bf16.msra.mxu1 %v1105_v1  ;;  %s411_s30 = scalar_lea.vmem %s1382_s0, %s1274_s27  ;;  %s416_s14 = scalar_lea.vmem %s1383_s1, %s1274_s27  ;;  %v1140_v6 = vld [vmem:[%s1388_s6] ss:$0 sm:$0xff]  ;;  %v568_v36 = vand.u32 127, %v567_v35  ;;  %v1107_v46 = vld [vmem:[%s1387_s5 + $0x8] sm:$0xff] }
   0xe   : > { %v1099_v4 = vld [vmem:[%s411_s30] sm:$0xff]  ;;  %553 = vmatpush.bf16.msra.mxu2 %v1107_v46  ;;  %s421_s12 = scalar_lea.vmem %s1384_s2, %s1274_s27 }
   0xf   : > { %v1100_v5 = vld [vmem:[%s416_s14] sm:$0xff]  ;;  %vm569_vm2 = vcmp.lt.s32.totalorder %v568_v36, 8  ;;  %s1188_s14 = smov 8  }
  0x10   : > { %470 = vmatpush.bf16.msra.mxu0 %v1102_v2  ;;  %v1141_v9 = vld [vmem:[%s1389_s7] ss:$0 sm:$0xff]  ;;  %v570_v39 = vsel %vm569_vm2, 0.0, %v1187_v38 }
  0x11   : > { %512 = vmatpush.bf16.msra.mxu1 %v1104_v3  ;;  %v1106_v47 = vld [vmem:[%s1387_s5] sm:$0xff] }
  0x12   : > { %554 = vmatpush.bf16.msra.mxu2 %v1106_v47  ;;  %v1101_v48 = vld [vmem:[%s421_s12] sm:$0xff] }
  0x13   : > { %1049 = vmatmul.msk.bf16.vlgmr.msra.gmra.mxu0 %vm459_vm0, %v1099_v4 }
  0x14   : > { %1062 = vmatmul.msk.bf16.vlgmr.msra.gmra.mxu1 %vm459_vm0, %v1100_v5 }
  0x15   : > { %1075 = vmatmul.msk.bf16.vlgmr.msra.gmra.mxu2 %vm459_vm0, %v1101_v48 }
  0x90   : > { %v472_v7 = vpop.f32.mrf.mxu0 }
  0x91   : > { %v514_v8 = vpop.f32.mrf.mxu1  ;;  %v473_v10 = vadd.f32 %v1140_v6, %v472_v7 }
  0x92   : > { %v515_v11 = vadd.f32 %v1141_v9, %v514_v8 }
  0x93   : > { %v561_v12 = vpack.c.bf16 %v473_v10, %v473_v10 }
  0x94   : > { %v563_v15 = vpack.c.bf16 %v515_v11, %v515_v11 }
  0x95   : > { %v573_v18 = vunpack.c.l.b16 %v561_v12 }
  0x96   : > { %v578_v21 = vunpack.c.l.b16 %v563_v15 }
  0x98   : > { %v474_v13 = vpop.f32.mrf.mxu0 }
  0x99   : > { %v516_v14 = vpop.f32.mrf.mxu1  ;;  %v475_v16 = vadd.f32 %v1140_v6, %v474_v13  ;;  %v1142_v13 = vld [vmem:[%s1390_s8] ss:$0 sm:$0xff] }
  0x9a   : > { %v517_v17 = vadd.f32 %v1141_v9, %v516_v14  ;;  %v556_v14 = vpop.f32.mrf.mxu2 }
  0x9b   : > { %v562_v19 = vpack.c.bf16 %v475_v16, %v475_v16  ;;  %v557_v16 = vadd.f32 %v1142_v13, %v556_v14 }
  0x9c   : > { %v564_v20 = vpack.c.bf16 %v517_v17, %v517_v17 }
  0x9d   : > { %v574_v22 = vunpack.c.l.b16 %v562_v19  ;;  %v565_v19 = vpack.c.bf16 %v557_v16, %v557_v16 }
  0x9e   : > { %v579_v23 = vunpack.c.l.b16 %v564_v20 }
  0x9f   : > { %v575_v24 = vpack.c.b16 %v574_v22, %v573_v18 }
  0xa0   : > { %v580_v25 = vpack.c.b16 %v579_v23, %v578_v21 }
  0xa1   : > { %728 = vrot.lane.b32.xlu2 %v575_v24, %s1184_s21 }
  0xa2   : > { %730 = vrot.lane.b32.xlu1 %v580_v25, %s1184_s21  ;;  %657 = vrot.lane.b32.xlu0 %v580_v25, %s1185_s22  ;;  %v586_v26 = vsel %vm581_vm1, %v580_v25, 0  ;;  %v558_v20 = vpop.f32.mrf.mxu2 }
  0xa3   : > { %595 = vmatpush.bf16.xpose.msra.mxu3 %v586_v26  ;;  %v559_v22 = vadd.f32 %v1142_v13, %v558_v20 }
  0xa5   : > { %v566_v26 = vpack.c.bf16 %v559_v22, %v559_v22 }
  0xa9   : > { %801 = vrot.lane.b32.xlu2 %v575_v24, %s1186_s23 }
  0xaa   : > { %803 = vrot.lane.b32.xlu1 %v580_v25, %s1186_s23  ;;  %655 = vrot.lane.b32.xlu0 %v575_v24, %s1185_s22  ;;  %v634_v25 = vunpack.c.l.b16 %v565_v19 }
  0xab   : > { %1076 = vmatmul.msk.bf16.vlgmr.msra.gmra.mxu3 %vm581_vm1, %v575_v24 }
  0xfb   : > { %v729_v31 = vpop.permute.xlu2 %728 }
 0x103   : > { %v802_v37 = vpop.permute.xlu2 %801 }
 0x114   : > { %v731_v27 = vpop.permute.xlu1 %730  ;;  %v658_v28 = vpop.permute.xlu0 %657 }
 0x115   : > { %v663_v29 = vsel %vm581_vm1, %v658_v28, 0  ;;  %v736_v30 = vsel %vm581_vm1, %v731_v27, 0 }
 0x116   : > { %672 = vmatpush.bf16.xpose.msrb.mxu1 %v663_v29  ;;  %745 = vmatpush.bf16.xpose.msrb.mxu3 %v736_v30  ;;  %v635_v29 = vunpack.c.l.b16 %v566_v26 }
 0x11c   : > { %v804_v32 = vpop.permute.xlu1 %803  ;;  %v656_v33 = vpop.permute.xlu0 %655 }
 0x11d   : > { %v809_v34 = vsel %vm581_vm1, %v804_v32, 0  ;;  %1078 = vmatmul.msk.bf16.vlgmr.msrb.gmra.mxu1 %vm581_vm1, %v656_v33  ;;  %1080 = vmatmul.msk.bf16.vlgmr.msrb.gmra.mxu3 %vm581_vm1, %v729_v31  ;;  %v636_v33 = vpack.c.b16 %v635_v29, %v634_v25 }
 0x11e   : > { %818 = vmatpush.bf16.xpose.msra.mxu1 %v809_v34 }
 0x11f   : > { %648 = vmatpush.bf16.msrb.mxu0 %v636_v33 }
 0x12d   : > { %1082 = vmatmul.msk.bf16.vlgmr.msra.gmra.mxu1 %vm581_vm1, %v802_v37 }
 0x12e   : > { %v597_v40 = vpop.f32.mrf.mxu3 }
 0x12f   : > { %v598_v41 = vadd.f32 %v597_v40, %v570_v39 }
 0x131   : > { %v603_v42 = vsel %vm602_vm3, %v598_v41, -inf }
 0x132   : > { %604 = vmax.xlane.f32.xlu2 %v603_v42 }
 0x136   : > { %v599_v43 = vpop.f32.mrf.mxu3 }
 0x137   : > { %v600_v44 = vadd.f32 %v599_v43, %v570_v39 }
 0x139   : > { %v606_v45 = vsel %vm602_vm3, %v600_v44, -inf }
 0x13a   : > { %607 = vmax.xlane.f32.xlu2 %v606_v45 }
 0x19a   : > { %v674_v49 = vpop.f32.mrf.mxu1 }
 0x19b   : > { %v675_v50 = vadd.f32 %v674_v49, %v570_v39 }
 0x19d   : > { %v679_v51 = vsel %vm602_vm3, %v675_v50, -inf }
 0x19e   : > { %680 = vmax.xlane.f32.xlu0 %v679_v51 }
 0x1a0   : > { %v747_v52 = vpop.f32.mrf.mxu3 }
 0x1a1   : > { %v748_v53 = vadd.f32 %v747_v52, %v570_v39 }
 0x1a2   : > { %v676_v54 = vpop.f32.mrf.mxu1 }
 0x1a3   : > { %v677_v55 = vadd.f32 %v676_v54, %v570_v39  ;;  %v752_v56 = vsel %vm602_vm3, %v748_v53, -inf }
 0x1a4   : > { %753 = vmax.xlane.f32.xlu2 %v752_v56 }
 0x1a5   : > { %v605_v57 = vpop.xlane.xlu2 %604  ;;  %v682_v58 = vsel %vm602_vm3, %v677_v55, -inf }
 0x1a6   : > { %683 = vmax.xlane.f32.xlu1 %v682_v58  ;;  %v609_v61 = vsub.f32 %v598_v41, %v605_v57 }
 0x1a8   : > { %v749_v59 = vpop.f32.mrf.mxu3  ;;  %v611_v1 = vmul.f32 1.442695, %v609_v61 }
 0x1a9   : > { %v750_v60 = vadd.f32 %v749_v59, %v570_v39 }
 0x1aa   : > { %v820_v62 = vpop.f32.mrf.mxu1  ;;  %1144 = vpow2.f32 %v611_v1 }
 0x1ab   : > { %v755_v63 = vsel %vm602_vm3, %v750_v60, -inf  ;;  %v821_v3 = vadd.f32 %v820_v62, %v570_v39 }
 0x1ac   : > { %756 = vmax.xlane.f32.xlu0 %v755_v63 }
 0x1ad   : > { %v608_v0 = vpop.xlane.xlu2 %607  ;;  %v825_v7 = vsel %vm602_vm3, %v821_v3, -inf }
 0x1ae   : > { %v610_v2 = vsub.f32 %v600_v44, %v608_v0 }
 0x1b0   : > { %v613_v4 = vmul.f32 1.442695, %v610_v2  ;;  %v1325_v9 = vpop.eup %1144 }
 0x1b1   : > { %v615_v11 = vsel %vm602_vm3, %v1325_v9, 0.0 }
 0x1b2   : > { %v822_v5 = vpop.f32.mrf.mxu1  ;;  %1146 = vpow2.f32 %v613_v4 }
 0x1b3   : > { %v823_v6 = vadd.f32 %v822_v5, %v570_v39 }
 0x1b4   : > { %826 = vmax.xlane.f32.xlu0 %v825_v7 }
 0x1b5   : > { %v828_v8 = vsel %vm602_vm3, %v823_v6, -inf }
 0x1b6   : > { %829 = vmax.xlane.f32.xlu1 %v828_v8 }
 0x1b8   : > { %v1327_v10 = vpop.eup %1146 }
 0x1b9   : > { %v618_v12 = vsel %vm602_vm3, %v1327_v10, 0.0 }
 0x1bc   : > { %616 = vadd.xlane.f32.xlu0 %v615_v11 }
 0x1be   : > { %619 = vadd.xlane.f32.xlu1 %v618_v12 }
 0x211   : > { %v681_v15 = vpop.xlane.xlu0 %680 }
 0x212   : > { %v685_v17 = vsub.f32 %v675_v50, %v681_v15 }
 0x214   : > { %v687_v18 = vmul.f32 1.442695, %v685_v17 }
 0x216   : > { %1148 = vpow2.f32 %v687_v18 }
 0x217   : > { %v754_v21 = vpop.xlane.xlu2 %753 }
 0x218   : > { %v758_v23 = vsub.f32 %v748_v53, %v754_v21 }
 0x219   : > { %v684_v24 = vpop.xlane.xlu1 %683 }
 0x21a   : > { %v760_v27 = vmul.f32 1.442695, %v758_v23  ;;  %v686_v28 = vsub.f32 %v677_v55, %v684_v24 }
 0x21c   : > { %v1149_v30 = vpop.eup %1148  ;;  %1150 = vpow2.f32 %v760_v27  ;;  %v689_v31 = vmul.f32 1.442695, %v686_v28 }
 0x21d   : > { %v691_v32 = vsel %vm602_vm3, %v1149_v30, 0.0 }
 0x21e   : > { %1152 = vpow2.f32 %v689_v31  ;;  %692 = vadd.xlane.f32.xlu1 %v691_v32 }
 0x21f   : > { %v757_v34 = vpop.xlane.xlu0 %756 }
 0x220   : > { %v759_v35 = vsub.f32 %v750_v60, %v757_v34 }
 0x222   : > { %v1337_v36 = vpop.eup %1150  ;;  %v762_v37 = vmul.f32 1.442695, %v759_v35 }
 0x223   : > { %v764_v38 = vsel %vm602_vm3, %v1337_v36, 0.0 }
 0x224   : > { %v1153_v39 = vpop.eup %1152  ;;  %1154 = vpow2.f32 %v762_v37  ;;  %765 = vadd.xlane.f32.xlu0 %v764_v38 }
 0x225   : > { %v694_v40 = vsel %vm602_vm3, %v1153_v39, 0.0 }
 0x226   : > { %695 = vadd.xlane.f32.xlu2 %v694_v40 }
 0x227   : > { %v827_v41 = vpop.xlane.xlu0 %826 }
 0x228   : > { %v831_v42 = vsub.f32 %v821_v3, %v827_v41 }
 0x229   : > { %v830_v43 = vpop.xlane.xlu1 %829 }
 0x22a   : > { %v1342_v44 = vpop.eup %1154  ;;  %v833_v45 = vmul.f32 1.442695, %v831_v42  ;;  %v832_v46 = vsub.f32 %v823_v6, %v830_v43 }
 0x22b   : > { %v767_v47 = vsel %vm602_vm3, %v1342_v44, 0.0 }
 0x22c   : > { %1156 = vpow2.f32 %v833_v45  ;;  %v835_v48 = vmul.f32 1.442695, %v832_v46  ;;  %768 = vadd.xlane.f32.xlu1 %v767_v47  ;;  %v1109_v47 = vld [vmem:[%s1391_s9 + $0x8] sm:$0xff] }
 0x22d   : > { %935 = vmatpush.bf16.msra.mxu3 %v1109_v47 }
 0x22e   : > { %1158 = vpow2.f32 %v835_v48  ;;  %v1108_v48 = vld [vmem:[%s1391_s9] sm:$0xff] }
 0x22f   : > { %v617_v49 = vpop.xlane.xlu0 %616 }
 0x230   : > { %1160 = vrcp.f32 %v617_v49 }
 0x231   : > { %v620_v50 = vpop.xlane.xlu1 %619  ;;  %936 = vmatpush.bf16.msra.mxu3 %v1108_v48 }
 0x232   : > { %v1157_v51 = vpop.eup %1156  ;;  %1162 = vrcp.f32 %v620_v50 }
 0x233   : > { %v837_v52 = vsel %vm602_vm3, %v1157_v51, 0.0 }
 0x234   : > { %v1159_v53 = vpop.eup %1158  ;;  %838 = vadd.xlane.f32.xlu0 %v837_v52 }
 0x235   : > { %v840_v54 = vsel %vm602_vm3, %v1159_v53, 0.0 }
 0x236   : > { %v1161_v55 = vpop.eup %1160  ;;  %841 = vadd.xlane.f32.xlu1 %v840_v54 }
 0x237   : > { %v623_v56 = vmul.f32 %v1161_v55, %v1325_v9 }
 0x238   : > { %v1163_v57 = vpop.eup %1162 }
 0x239   : > { %v625_v58 = vpack.c.bf16 %v623_v56, %v623_v56  ;;  %v624_v59 = vmul.f32 %v1163_v57, %v1327_v10 }
 0x23b   : > { %v626_v60 = vpack.c.bf16 %v624_v59, %v624_v59  ;;  %v629_v61 = vunpack.c.l.b16 %v625_v58 }
 0x23d   : > { %v630_v62 = vunpack.c.l.b16 %v626_v60 }
 0x23e   : > { %708 = vrot.lane.b32.xlu2 %v636_v33, %s1185_s22 }
 0x23f   : > { %v631_v63 = vpack.c.b16 %v630_v62, %v629_v61 }
 0x241   : > { %1077 = vmatmul.msk.bf16.vlgmr.msrb.gmra.mxu0 %vm602_vm3, %v631_v63 }
 0x248   : > { %854 = vrot.lane.b32.xlu0 %v636_v33, %s1186_s23  ;;  %s1098_s23 = sshll.u32 %s1395_s18, 4 }
 0x249   : > { %s426_s29 = scalar_lea.vmem %s1393_s11, %s1098_s23 }
 0x24f   : > { %781 = vrot.lane.b32.xlu1 %v636_v33, %s1184_s21 }
 0x291   : > { %v693_v0 = vpop.xlane.xlu1 %692 }
 0x292   : > { %1164 = vrcp.f32 %v693_v0 }
 0x297   : > { %v766_v4 = vpop.xlane.xlu0 %765 }
 0x298   : > { %v1165_v2 = vpop.eup %1164 }
 0x299   : > { %v696_v1 = vpop.xlane.xlu2 %695  ;;  %v699_v3 = vmul.f32 %v1165_v2, %v1149_v30 }
 0x29a   : > { %1166 = vrcp.f32 %v696_v1  ;;  %v1143_v1 = vld [vmem:[%s1392_s10] ss:$0 sm:$0xff] }
 0x29b   : > { %v701_v6 = vpack.c.bf16 %v699_v3, %v699_v3 }
 0x29d   : > { %v705_v11 = vunpack.c.l.b16 %v701_v6 }
 0x29f   : > { %v769_v8 = vpop.xlane.xlu1 %768 }
 0x2a0   : > { %v1167_v5 = vpop.eup %1166 }
 0x2a1   : > { %v700_v7 = vmul.f32 %v1167_v5, %v1153_v39  ;;  %v709_v9 = vpop.permute.xlu2 %708 }
 0x2a2   : > { %721 = vmatpush.bf16.msrb.mxu2 %v709_v9 }
 0x2a3   : > { %v702_v10 = vpack.c.bf16 %v700_v7, %v700_v7 }
 0x2a5   : > { %v706_v12 = vunpack.c.l.b16 %v702_v10 }
 0x2a7   : > { %v839_v13 = vpop.xlane.xlu0 %838  ;;  %v707_v14 = vpack.c.b16 %v706_v12, %v705_v11 }
 0x2a8   : > { %1168 = vrcp.f32 %v839_v13 }
 0x2a9   : > { %v842_v15 = vpop.xlane.xlu1 %841  ;;  %1079 = vmatmul.msk.bf16.vlgmr.msrb.gmra.mxu2 %vm602_vm3, %v707_v14 }
 0x2aa   : > { %1170 = vrcp.f32 %v842_v15 }
 0x2ab   : > { %1172 = vrcp.f32 %v769_v8 }
 0x2ac   : > { %1174 = vrcp.f32 %v766_v4 }
 0x2ae   : > { %v1169_v16 = vpop.eup %1168 }
 0x2af   : > { %v845_v19 = vmul.f32 %v1169_v16, %v1157_v51 }
 0x2b0   : > { %v1171_v17 = vpop.eup %1170 }
 0x2b1   : > { %v846_v18 = vmul.f32 %v1171_v17, %v1159_v53  ;;  %v1173_v20 = vpop.eup %1172  ;;  %v847_v23 = vpack.c.bf16 %v845_v19, %v845_v19 }
 0x2b2   : > { %v1175_v22 = vpop.eup %1174  ;;  %v773_v24 = vmul.f32 %v1173_v20, %v1342_v44 }
 0x2b3   : > { %v848_v21 = vpack.c.bf16 %v846_v18, %v846_v18  ;;  %v772_v26 = vmul.f32 %v1175_v22, %v1337_v36  ;;  %v851_v27 = vunpack.c.l.b16 %v847_v23 }
 0x2b4   : > { %v775_v29 = vpack.c.bf16 %v773_v24, %v773_v24 }
 0x2b5   : > { %v852_v25 = vunpack.c.l.b16 %v848_v21  ;;  %v774_v31 = vpack.c.bf16 %v772_v26, %v772_v26 }
 0x2b6   : > { %v779_v32 = vunpack.c.l.b16 %v775_v29 }
 0x2b7   : > { %v853_v30 = vpack.c.b16 %v852_v25, %v851_v27  ;;  %v778_v33 = vunpack.c.l.b16 %v774_v31 }
 0x2b9   : > { %v780_v35 = vpack.c.b16 %v779_v32, %v778_v33 }
 0x2ba   : > { %v855_v28 = vpop.permute.xlu0 %854 }
 0x2bb   : > { %867 = vmatpush.bf16.msra.mxu2 %v855_v28 }
 0x2be   : > { %1083 = vmatmul.msk.bf16.vlgmr.msra.gmra.mxu2 %vm602_vm3, %v853_v30  ;;  %v650_v38 = vpop.f32.mrf.mxu0 }
 0x2c1   : > { %v782_v34 = vpop.permute.xlu1 %781 }
 0x2c2   : > { %794 = vmatpush.bf16.msra.mxu0 %v782_v34 }
 0x2c5   : > { %1081 = vmatmul.msk.bf16.vlgmr.msra.gmra.mxu0 %vm602_vm3, %v780_v35 }
 0x2c6   : > { %v652_v36 = vpop.f32.mrf.mxu0 }
 0x32c   : > { %v723_v37 = vpop.f32.mrf.mxu2 }
 0x334   : > { %v725_v39 = vpop.f32.mrf.mxu2 }
 0x335   : > { %v1125_v40 = vpack.i.bf16 %v725_v39, %v723_v37 }
 0x337   : > { %1126 = vrot.lane.b32.xlu2 %v1125_v40, %s1188_s14 }
 0x341   : > { %v869_v41 = vpop.f32.mrf.mxu2 }
 0x342   : > { %v796_v42 = vpop.f32.mrf.mxu0 }
 0x349   : > { %v871_v43 = vpop.f32.mrf.mxu2 }
 0x34a   : > { %v1135_v44 = vpack.i.bf16 %v871_v43, %v869_v41  ;;  %v798_v45 = vpop.f32.mrf.mxu0 }
 0x34b   : > { %v1130_v46 = vpack.i.bf16 %v798_v45, %v796_v42 }
 0x34c   : > { %1136 = vrot.lane.b32.xlu0 %v1135_v44, %s1189_s15 }
 0x34d   : > { %1131 = vrot.lane.b32.xlu2 %v1130_v46, %s1190_s16 }
 0x391   : > { %v1127_v49 = vpop.permute.xlu2 %1126 }
 0x392   : > { %v1129_v51 = vunpack.i.h.bf16 %v1127_v49  ;;  %v1128_v52 = vunpack.i.l.bf16 %v1127_v49 }
 0x394   : > { %v899_v56 = vsel %vm581_vm1, %v652_v36, %v1129_v51  ;;  %v898_v57 = vsel %vm581_vm1, %v650_v38, %v1128_v52 }
 0x3a7   : > { %v1132_v50 = vpop.permute.xlu2 %1131 }
 0x3a8   : > { %v1134_v53 = vunpack.i.h.bf16 %v1132_v50  ;;  %v1133_v54 = vunpack.i.l.bf16 %v1132_v50 }
 0x3aa   : > { %v900_v60 = vsel %vm602_vm3, %v898_v57, %v1133_v54  ;;  %v901_v61 = vsel %vm602_vm3, %v899_v56, %v1134_v53 }
 0x3be   : > { %v1137_v55 = vpop.permute.xlu0 %1136 }
 0x3bf   : > { %v1139_v58 = vunpack.i.h.bf16 %v1137_v55  ;;  %v1138_v59 = vunpack.i.l.bf16 %v1137_v55 }
 0x3c1   : > { %v904_v62 = vsel %vm902_vm4, %v901_v61, %v1139_v58  ;;  %v903_v63 = vsel %vm902_vm4, %v900_v60, %v1138_v59 }
 0x3c2   : > { %v905_v0 = vpack.c.bf16 %v904_v62, %v903_v63 }
 0x3c4   : > { %1092 = vmatmul.msk.bf16.vlgmr.msra.gmra.mxu3 %vm459_vm0, %v905_v0 }
 0x447   : > { %v938_v2 = vpop.f32.mrf.mxu3 }
 0x448   : > { %v939_v3 = vadd.f32 %v1143_v1, %v938_v2 }
 0x44a   : > { %943 = vst.msk [vmem:[%s426_s29] sm:$0xff] %vm459_vm0, %v939_v3 }
 0x44f   : > { %v940_v4 = vpop.f32.mrf.mxu3 }
 0x450   : > { %v941_v5 = vadd.f32 %v1143_v1, %v940_v4 }
 0x452   : > { %944 = vst.msk [vmem:[%s426_s29 + $0x8] sm:$0xff] %vm459_vm0, %v941_v5 }
 0x453 PF: > { %s21_s17 = sadd.s32 1, %s1182_s17  }
 0x454   : > { %p18_p4 = scmp.ge.s32.totalorder %s21_s17, 4  }
 0x456   :  { %20 = sbr.rel (!%p18_p4) target bundleno = 1 (0x1), region = 100 }

</bundles_post_ra>
